<compile_context>
chip_gen: v7x
topology: tpu7x:2x2x1
jax: 0.10.0
libtpu: 0.0.40
codegen_flags: <defaults>
</compile_context>

<pallas_src>
import functools

import jax
import jax.numpy as jnp
from jax import lax
from jax.experimental import pallas as pl
from jax.experimental.pallas import tpu as pltpu

EPS = 1e-5
LANE = 128


def _round_up(x, m):
    return (x + m - 1) // m * m


# ------------------------------ Pallas kernel -------------------------------

def _make_fused_block_kernel(Ho, Wo, Cp):
    """Fused conv1+bn1+relu -> conv2+bn2+residual+relu for one image block."""
    HoWo = Ho * Wo

    def kernel(p1_ref, w1_ref, s1_ref, b1_ref,
               w2_ref, s2_ref, b2_ref, res_ref,
               o_ref, xpad_ref):
        # ---- conv1 (im2col matmul, bf16 in / f32 acc) + bn1 + relu ---------
        h1 = jnp.dot(p1_ref[...], w1_ref[...],
                     preferred_element_type=jnp.float32)          # (HoWo, Cp)
        h1 = jnp.maximum(h1 * s1_ref[...] + b1_ref[...], 0.0)

        # ---- stage out1 in VMEM, zero-padded spatially for the 3x3 conv ----
        xpad_ref[...] = jnp.zeros_like(xpad_ref)
        xpad_ref[1:Ho + 1, 1:Wo + 1, :] = (
            h1.reshape(Ho, Wo, Cp).astype(xpad_ref.dtype))
        xp = xpad_ref[...]                                        # (Ho+2, Wo+2, Cp)

        # ---- conv2 as 9 shifted-window matmuls accumulated in f32 ----------
        acc = jnp.zeros((HoWo, Cp), jnp.float32)
        for kh in range(3):
            for kw in range(3):
                win = xp[kh:kh + Ho, kw:kw + Wo, :].reshape(HoWo, Cp)
                acc = acc + jnp.dot(win, w2_ref[kh * 3 + kw],
                                    preferred_element_type=jnp.float32)

        # ---- bn2 + residual add + relu (f32 epilogue, lane-dense store) ----
        out = acc * s2_ref[...] + b2_ref[...] + res_ref[...]
        o_ref[...] = jnp.maximum(out, 0.0)

    return kernel


# -------------------------------- JAX glue ----------------------------------

def _im2col(x_nhwc, stride):
    """3x3 / pad=1 patch extraction. Returns ([N*Ho*Wo, 9*C], (Ho, Wo))."""
    N, H, W, C = x_nhwc.shape
    xp = jnp.pad(x_nhwc, ((0, 0), (1, 1), (1, 1), (0, 0)))
    Ho = (H + 2 - 3) // stride + 1
    Wo = (W + 2 - 3) // stride + 1
    cols = []
    for kh in range(3):
        for kw in range(3):
            cols.append(xp[:, kh:kh + stride * (Ho - 1) + 1:stride,
                             kw:kw + stride * (Wo - 1) + 1:stride, :])
    p = jnp.stack(cols, axis=3)                  # [N, Ho, Wo, 9, C]
    return p.reshape(N * Ho * Wo, 9 * C), (Ho, Wo)


@functools.partial(jax.jit, static_argnames=('stride', 'option'))
def basic_block_forward(x_nchw, params, stride, option='A'):
    """BasicBlock.forward. x_nchw: [N, Cin, H, W] f32 -> [N, planes, Ho, Wo]."""
    N, Cin, H, W = x_nchw.shape
    w1 = params['conv1_w']                       # (planes, Cin, 3, 3) OIHW
    w2 = params['conv2_w']                       # (planes, planes, 3, 3)
    planes = w1.shape[0]
    Cp = _round_up(planes, LANE)                 # lane-dense output channels
    K1 = 9 * Cin
    K1p = _round_up(K1, LANE)                    # aligned MXU contraction dim

    x_nhwc = jnp.transpose(x_nchw, (0, 2, 3, 1))
    p1, (Ho, Wo) = _im2col(x_nhwc, stride)
    HoWo = Ho * Wo
    assert HoWo % 8 == 0, "per-image spatial block must be sublane-aligned"

    # bf16 operands for the MXU, zero-padded to aligned shapes.
    p1 = jnp.pad(p1, ((0, 0), (0, K1p - K1))).astype(jnp.bfloat16)
    w1_mat = jnp.transpose(w1, (2, 3, 1, 0)).reshape(K1, planes)
    w1_mat = jnp.pad(w1_mat, ((0, K1p - K1), (0, Cp - planes))).astype(jnp.bfloat16)
    w2_mat = jnp.transpose(w2, (2, 3, 1, 0)).reshape(9, planes, planes)
    w2_mat = jnp.pad(w2_mat,
                     ((0, 0), (0, Cp - planes), (0, Cp - planes))).astype(jnp.bfloat16)

    def fold_pad(g, b, m, v):
        s = g / jnp.sqrt(v + EPS)
        t = b - m * s
        s = jnp.pad(s, (0, Cp - planes)).reshape(1, Cp).astype(jnp.float32)
        t = jnp.pad(t, (0, Cp - planes)).reshape(1, Cp).astype(jnp.float32)
        return s, t

    s1, b1 = fold_pad(params['bn1_gamma'], params['bn1_beta'],
                      params['bn1_mean'], params['bn1_var'])
    s2, b2 = fold_pad(params['bn2_gamma'], params['bn2_beta'],
                      params['bn2_mean'], params['bn2_var'])

    # residual path (ZeroPaddingX2 for option 'A')
    if stride != 1 or Cin != planes:
        if option == 'A':
            pad = Cin // 2
            assert Cin + 2 * pad == planes, (
                "option-'A' ZeroPaddingX2 needs planes == in_planes + 2*(in_planes//2)")
            ds = x_nchw[:, :, ::2, ::2]
            ds = jnp.pad(ds, ((0, 0), (pad, pad), (0, 0), (0, 0)))
        else:
            # TODO(synk): option 'B' (1x1 conv + BN downsample) not implemented.
            raise NotImplementedError("option 'B' downsample not implemented")
    else:
        ds = x_nchw
    res = jnp.transpose(ds, (0, 2, 3, 1)).reshape(N * HoWo, planes)
    res = jnp.pad(res, ((0, 0), (0, Cp - planes))).astype(jnp.float32)

    kernel = _make_fused_block_kernel(Ho, Wo, Cp)
    out = pl.pallas_call(
        kernel,
        out_shape=jax.ShapeDtypeStruct((N * HoWo, Cp), jnp.float32),
        grid=(N,),
        in_specs=[
            pl.BlockSpec((HoWo, K1p), lambda n: (n, 0)),     # conv1 patches
            pl.BlockSpec((K1p, Cp), lambda n: (0, 0)),       # w1 (resident)
            pl.BlockSpec((1, Cp), lambda n: (0, 0)),         # bn1 scale
            pl.BlockSpec((1, Cp), lambda n: (0, 0)),         # bn1 bias
            pl.BlockSpec((9, Cp, Cp), lambda n: (0, 0, 0)),  # w2 (resident)
            pl.BlockSpec((1, Cp), lambda n: (0, 0)),         # bn2 scale
            pl.BlockSpec((1, Cp), lambda n: (0, 0)),         # bn2 bias
            pl.BlockSpec((HoWo, Cp), lambda n: (n, 0)),      # residual
        ],
        out_specs=pl.BlockSpec((HoWo, Cp), lambda n: (n, 0)),
        scratch_shapes=[pltpu.VMEM((Ho + 2, Wo + 2, Cp), jnp.bfloat16)],
        compiler_params=pltpu.CompilerParams(
            dimension_semantics=("parallel",)),
    )(p1, w1_mat, s1, b1, w2_mat, s2, b2, res)

    out = out[:, :planes].reshape(N, Ho, Wo, planes)
    return jnp.transpose(out, (0, 3, 1, 2))


# -------------------------------- reference ---------------------------------

def _ref_forward(x, params, stride, option='A'):
    def conv(x_, w, s):
        return lax.conv_general_dilated(
            x_, w, (s, s), ((1, 1), (1, 1)),
            dimension_numbers=('NCHW', 'OIHW', 'NCHW'))

    def bn(x_, g, b, m, v):
        g, b, m, v = (t[None, :, None, None] for t in (g, b, m, v))
        return g * (x_ - m) / jnp.sqrt(v + EPS) + b

    out = jax.nn.relu(bn(conv(x, params['conv1_w'], stride),
                         params['bn1_gamma'], params['bn1_beta'],
                         params['bn1_mean'], params['bn1_var']))
    out = bn(conv(out, params['conv2_w'], 1),
             params['bn2_gamma'], params['bn2_beta'],
             params['bn2_mean'], params['bn2_var'])
    Cin = x.shape[1]
    planes = params['conv1_w'].shape[0]
    if stride != 1 or Cin != planes:
        ds = x[:, :, ::2, ::2]
        pad = Cin // 2
        ds = jnp.pad(ds, ((0, 0), (pad, pad), (0, 0), (0, 0)))
    else:
        ds = x
    return jax.nn.relu(out + ds)


# ----------------------------------- main ------------------------------------

if __name__ == "__main__":
    key = jax.random.PRNGKey(0)
    ks = jax.random.split(key, 12)

    N, in_planes, planes, H, W, stride = 2, 4, 8, 16, 16, 2

    params = {
        'conv1_w':   0.1 * jax.random.normal(ks[0], (planes, in_planes, 3, 3), jnp.float32),
        'bn1_gamma': 1.0 + 0.1 * jax.random.normal(ks[1], (planes,), jnp.float32),
        'bn1_beta':  0.1 * jax.random.normal(ks[2], (planes,), jnp.float32),
        'bn1_mean':  0.05 * jax.random.normal(ks[3], (planes,), jnp.float32),
        'bn1_var':   jax.random.uniform(ks[4], (planes,), jnp.float32, 0.5, 1.5),
        'conv2_w':   0.1 * jax.random.normal(ks[5], (planes, planes, 3, 3), jnp.float32),
        'bn2_gamma': 1.0 + 0.1 * jax.random.normal(ks[6], (planes,), jnp.float32),
        'bn2_beta':  0.1 * jax.random.normal(ks[7], (planes,), jnp.float32),
        'bn2_mean':  0.05 * jax.random.normal(ks[8], (planes,), jnp.float32),
        'bn2_var':   jax.random.uniform(ks[9], (planes,), jnp.float32, 0.5, 1.5),
    }
    x = jax.random.normal(ks[10], (N, in_planes, H, W), jnp.float32)

    out = jax.block_until_ready(basic_block_forward(x, params, stride, option='A'))
    ref = jax.block_until_ready(_ref_forward(x, params, stride, option='A'))

    assert out.shape == ref.shape == (N, planes, H // 2, W // 2)
    # bf16 matmul operands (f32 accumulation) -> tolerance relaxed vs pure-f32.
    max_err = float(jnp.max(jnp.abs(out - ref)))
    assert jnp.allclose(out, ref, atol=2e-2, rtol=2e-2), f"max abs err {max_err}"

    print("KERNEL_OK")
</pallas_src>

<mosaic_0001>
module attributes {stable_mosaic.version = 11 : i64} {
  func.func @kernel(%arg0: i32, %arg1: memref<64x128xbf16, #tpu.memory_space<vmem>>, %arg2: memref<128x128xbf16, #tpu.memory_space<vmem>>, %arg3: memref<1x128xf32, #tpu.memory_space<vmem>>, %arg4: memref<1x128xf32, #tpu.memory_space<vmem>>, %arg5: memref<9x128x128xbf16, #tpu.memory_space<vmem>>, %arg6: memref<1x128xf32, #tpu.memory_space<vmem>>, %arg7: memref<1x128xf32, #tpu.memory_space<vmem>>, %arg8: memref<64x128xf32, #tpu.memory_space<vmem>>, %arg9: memref<64x128xf32, #tpu.memory_space<vmem>>, %arg10: memref<10x10x128xbf16, #tpu.memory_space<vmem>>) attributes {dimension_semantics = [#tpu.dimension_semantics<parallel>], iteration_bounds = array<i64: 2>, scalar_prefetch = 0 : i64, scratch_operands = 1 : i64, tpu.core_type = #tpu.core_type<tc>, window_params = [{transform_indices = @transform_0, window_bounds = array<i64: 64, 128>}, {pipeline_mode = #tpu.pipeline_mode<synchronous>, transform_indices = @transform_1, window_bounds = array<i64: 128, 128>}, {pipeline_mode = #tpu.pipeline_mode<synchronous>, transform_indices = @transform_2, window_bounds = array<i64: 1, 128>}, {pipeline_mode = #tpu.pipeline_mode<synchronous>, transform_indices = @transform_3, window_bounds = array<i64: 1, 128>}, {pipeline_mode = #tpu.pipeline_mode<synchronous>, transform_indices = @transform_4, window_bounds = array<i64: 9, 128, 128>}, {pipeline_mode = #tpu.pipeline_mode<synchronous>, transform_indices = @transform_5, window_bounds = array<i64: 1, 128>}, {pipeline_mode = #tpu.pipeline_mode<synchronous>, transform_indices = @transform_6, window_bounds = array<i64: 1, 128>}, {transform_indices = @transform_7, window_bounds = array<i64: 64, 128>}, {transform_indices = @transform_8, window_bounds = array<i64: 64, 128>}]} {
    %c0 = arith.constant 0 : index
    %c0_0 = arith.constant 0 : index
    %0 = vector.load %arg1[%c0, %c0_0] : memref<64x128xbf16, #tpu.memory_space<vmem>>, vector<64x128xbf16>
    %c0_1 = arith.constant 0 : index
    %c0_2 = arith.constant 0 : index
    %1 = vector.load %arg2[%c0_1, %c0_2] : memref<128x128xbf16, #tpu.memory_space<vmem>>, vector<128x128xbf16>
    %cst = arith.constant dense<0.000000e+00> : vector<64x128xf32>
    %2 = tpu.matmul %0, %1, %cst {dimension_numbers = #tpu.dot_dimension_numbers<[1], [0], [0], [1], [0, 0, 1, 1], [], []>} : vector<64x128xbf16>, vector<128x128xbf16>, vector<64x128xf32> -> vector<64x128xf32>
    %c0_3 = arith.constant 0 : index
    %c0_4 = arith.constant 0 : index
    %3 = vector.load %arg3[%c0_3, %c0_4] : memref<1x128xf32, #tpu.memory_space<vmem>>, vector<1x128xf32>
    %4 = vector.broadcast %3 : vector<1x128xf32> to vector<64x128xf32>
    %5 = arith.mulf %2, %4 : vector<64x128xf32>
    %c0_5 = arith.constant 0 : index
    %c0_6 = arith.constant 0 : index
    %6 = vector.load %arg4[%c0_5, %c0_6] : memref<1x128xf32, #tpu.memory_space<vmem>>, vector<1x128xf32>
    %7 = vector.broadcast %6 : vector<1x128xf32> to vector<64x128xf32>
    %8 = arith.addf %5, %7 : vector<64x128xf32>
    %cst_7 = arith.constant 0.000000e+00 : f32
    %9 = vector.broadcast %cst_7 : f32 to vector<64x128xf32>
    %10 = arith.maximumf %8, %9 : vector<64x128xf32>
    %cst_8 = arith.constant 0.000000e+00 : bf16
    %11 = vector.broadcast %cst_8 : bf16 to vector<10x10x128xbf16>
    %c0_9 = arith.constant 0 : index
    %c0_10 = arith.constant 0 : index
    %c0_11 = arith.constant 0 : index
    %12 = vector.load %arg10[%c0_9, %c0_10, %c0_11] : memref<10x10x128xbf16, #tpu.memory_space<vmem>>, vector<10x10x128xbf16>
    tpu.vector_store %arg10[%c0_9, %c0_10, %c0_11], %11 {strides = array<i32>} : memref<10x10x128xbf16, #tpu.memory_space<vmem>>, vector<10x10x128xbf16>,
    %13 = vector.shape_cast %10 : vector<64x128xf32> to vector<8x8x128xf32>
    %14 = arith.truncf %13 : vector<8x8x128xf32> to vector<8x8x128xbf16>
    %c1 = arith.constant 1 : index
    %c1_12 = arith.constant 1 : index
    %c0_13 = arith.constant 0 : index
    %15 = vector.load %arg10[%c1, %c1_12, %c0_13] : memref<10x10x128xbf16, #tpu.memory_space<vmem>>, vector<8x8x128xbf16>
    tpu.vector_store %arg10[%c1, %c1_12, %c0_13], %14 {strides = array<i32>} : memref<10x10x128xbf16, #tpu.memory_space<vmem>>, vector<8x8x128xbf16>,
    %c0_14 = arith.constant 0 : index
    %c0_15 = arith.constant 0 : index
    %c0_16 = arith.constant 0 : index
    %16 = vector.load %arg10[%c0_14, %c0_15, %c0_16] : memref<10x10x128xbf16, #tpu.memory_space<vmem>>, vector<10x10x128xbf16>
    %cst_17 = arith.constant 0.000000e+00 : f32
    %17 = vector.broadcast %cst_17 : f32 to vector<64x128xf32>
    %18 = vector.extract_strided_slice %16 {offsets = [0, 0, 0], sizes = [8, 8, 128], strides = [1, 1, 1]} : vector<10x10x128xbf16> to vector<8x8x128xbf16>
    %19 = vector.shape_cast %18 : vector<8x8x128xbf16> to vector<64x128xbf16>
    %c0_18 = arith.constant 0 : index
    %c0_19 = arith.constant 0 : index
    %c0_20 = arith.constant 0 : index
    %20 = vector.load %arg5[%c0_18, %c0_19, %c0_20] : memref<9x128x128xbf16, #tpu.memory_space<vmem>>, vector<1x128x128xbf16>
    %21 = vector.shape_cast %20 : vector<1x128x128xbf16> to vector<128x128xbf16>
    %cst_21 = arith.constant dense<0.000000e+00> : vector<64x128xf32>
    %22 = tpu.matmul %19, %21, %cst_21 {dimension_numbers = #tpu.dot_dimension_numbers<[1], [0], [0], [1], [0, 0, 1, 1], [], []>} : vector<64x128xbf16>, vector<128x128xbf16>, vector<64x128xf32> -> vector<64x128xf32>
    %23 = arith.addf %17, %22 : vector<64x128xf32>
    %24 = vector.extract_strided_slice %16 {offsets = [0, 1, 0], sizes = [8, 8, 128], strides = [1, 1, 1]} : vector<10x10x128xbf16> to vector<8x8x128xbf16>
    %25 = vector.shape_cast %24 : vector<8x8x128xbf16> to vector<64x128xbf16>
    %c1_22 = arith.constant 1 : index
    %c0_23 = arith.constant 0 : index
    %c0_24 = arith.constant 0 : index
    %26 = vector.load %arg5[%c1_22, %c0_23, %c0_24] : memref<9x128x128xbf16, #tpu.memory_space<vmem>>, vector<1x128x128xbf16>
    %27 = vector.shape_cast %26 : vector<1x128x128xbf16> to vector<128x128xbf16>
    %cst_25 = arith.constant dense<0.000000e+00> : vector<64x128xf32>
    %28 = tpu.matmul %25, %27, %cst_25 {dimension_numbers = #tpu.dot_dimension_numbers<[1], [0], [0], [1], [0, 0, 1, 1], [], []>} : vector<64x128xbf16>, vector<128x128xbf16>, vector<64x128xf32> -> vector<64x128xf32>
    %29 = arith.addf %23, %28 : vector<64x128xf32>
    %30 = vector.extract_strided_slice %16 {offsets = [0, 2, 0], sizes = [8, 8, 128], strides = [1, 1, 1]} : vector<10x10x128xbf16> to vector<8x8x128xbf16>
    %31 = vector.shape_cast %30 : vector<8x8x128xbf16> to vector<64x128xbf16>
    %c2 = arith.constant 2 : index
    %c0_26 = arith.constant 0 : index
    %c0_27 = arith.constant 0 : index
    %32 = vector.load %arg5[%c2, %c0_26, %c0_27] : memref<9x128x128xbf16, #tpu.memory_space<vmem>>, vector<1x128x128xbf16>
    %33 = vector.shape_cast %32 : vector<1x128x128xbf16> to vector<128x128xbf16>
    %cst_28 = arith.constant dense<0.000000e+00> : vector<64x128xf32>
    %34 = tpu.matmul %31, %33, %cst_28 {dimension_numbers = #tpu.dot_dimension_numbers<[1], [0], [0], [1], [0, 0, 1, 1], [], []>} : vector<64x128xbf16>, vector<128x128xbf16>, vector<64x128xf32> -> vector<64x128xf32>
    %35 = arith.addf %29, %34 : vector<64x128xf32>
    %36 = vector.extract_strided_slice %16 {offsets = [1, 0, 0], sizes = [8, 8, 128], strides = [1, 1, 1]} : vector<10x10x128xbf16> to vector<8x8x128xbf16>
    %37 = vector.shape_cast %36 : vector<8x8x128xbf16> to vector<64x128xbf16>
    %c3 = arith.constant 3 : index
    %c0_29 = arith.constant 0 : index
    %c0_30 = arith.constant 0 : index
    %38 = vector.load %arg5[%c3, %c0_29, %c0_30] : memref<9x128x128xbf16, #tpu.memory_space<vmem>>, vector<1x128x128xbf16>
    %39 = vector.shape_cast %38 : vector<1x128x128xbf16> to vector<128x128xbf16>
    %cst_31 = arith.constant dense<0.000000e+00> : vector<64x128xf32>
    %40 = tpu.matmul %37, %39, %cst_31 {dimension_numbers = #tpu.dot_dimension_numbers<[1], [0], [0], [1], [0, 0, 1, 1], [], []>} : vector<64x128xbf16>, vector<128x128xbf16>, vector<64x128xf32> -> vector<64x128xf32>
    %41 = arith.addf %35, %40 : vector<64x128xf32>
    %42 = vector.extract_strided_slice %16 {offsets = [1, 1, 0], sizes = [8, 8, 128], strides = [1, 1, 1]} : vector<10x10x128xbf16> to vector<8x8x128xbf16>
    %43 = vector.shape_cast %42 : vector<8x8x128xbf16> to vector<64x128xbf16>
    %c4 = arith.constant 4 : index
    %c0_32 = arith.constant 0 : index
    %c0_33 = arith.constant 0 : index
    %44 = vector.load %arg5[%c4, %c0_32, %c0_33] : memref<9x128x128xbf16, #tpu.memory_space<vmem>>, vector<1x128x128xbf16>
    %45 = vector.shape_cast %44 : vector<1x128x128xbf16> to vector<128x128xbf16>
    %cst_34 = arith.constant dense<0.000000e+00> : vector<64x128xf32>
    %46 = tpu.matmul %43, %45, %cst_34 {dimension_numbers = #tpu.dot_dimension_numbers<[1], [0], [0], [1], [0, 0, 1, 1], [], []>} : vector<64x128xbf16>, vector<128x128xbf16>, vector<64x128xf32> -> vector<64x128xf32>
    %47 = arith.addf %41, %46 : vector<64x128xf32>
    %48 = vector.extract_strided_slice %16 {offsets = [1, 2, 0], sizes = [8, 8, 128], strides = [1, 1, 1]} : vector<10x10x128xbf16> to vector<8x8x128xbf16>
    %49 = vector.shape_cast %48 : vector<8x8x128xbf16> to vector<64x128xbf16>
    %c5 = arith.constant 5 : index
    %c0_35 = arith.constant 0 : index
    %c0_36 = arith.constant 0 : index
    %50 = vector.load %arg5[%c5, %c0_35, %c0_36] : memref<9x128x128xbf16, #tpu.memory_space<vmem>>, vector<1x128x128xbf16>
    %51 = vector.shape_cast %50 : vector<1x128x128xbf16> to vector<128x128xbf16>
    %cst_37 = arith.constant dense<0.000000e+00> : vector<64x128xf32>
    %52 = tpu.matmul %49, %51, %cst_37 {dimension_numbers = #tpu.dot_dimension_numbers<[1], [0], [0], [1], [0, 0, 1, 1], [], []>} : vector<64x128xbf16>, vector<128x128xbf16>, vector<64x128xf32> -> vector<64x128xf32>
    %53 = arith.addf %47, %52 : vector<64x128xf32>
    %54 = vector.extract_strided_slice %16 {offsets = [2, 0, 0], sizes = [8, 8, 128], strides = [1, 1, 1]} : vector<10x10x128xbf16> to vector<8x8x128xbf16>
    %55 = vector.shape_cast %54 : vector<8x8x128xbf16> to vector<64x128xbf16>
    %c6 = arith.constant 6 : index
    %c0_38 = arith.constant 0 : index
    %c0_39 = arith.constant 0 : index
    %56 = vector.load %arg5[%c6, %c0_38, %c0_39] : memref<9x128x128xbf16, #tpu.memory_space<vmem>>, vector<1x128x128xbf16>
    %57 = vector.shape_cast %56 : vector<1x128x128xbf16> to vector<128x128xbf16>
    %cst_40 = arith.constant dense<0.000000e+00> : vector<64x128xf32>
    %58 = tpu.matmul %55, %57, %cst_40 {dimension_numbers = #tpu.dot_dimension_numbers<[1], [0], [0], [1], [0, 0, 1, 1], [], []>} : vector<64x128xbf16>, vector<128x128xbf16>, vector<64x128xf32> -> vector<64x128xf32>
    %59 = arith.addf %53, %58 : vector<64x128xf32>
    %60 = vector.extract_strided_slice %16 {offsets = [2, 1, 0], sizes = [8, 8, 128], strides = [1, 1, 1]} : vector<10x10x128xbf16> to vector<8x8x128xbf16>
    %61 = vector.shape_cast %60 : vector<8x8x128xbf16> to vector<64x128xbf16>
    %c7 = arith.constant 7 : index
    %c0_41 = arith.constant 0 : index
    %c0_42 = arith.constant 0 : index
    %62 = vector.load %arg5[%c7, %c0_41, %c0_42] : memref<9x128x128xbf16, #tpu.memory_space<vmem>>, vector<1x128x128xbf16>
    %63 = vector.shape_cast %62 : vector<1x128x128xbf16> to vector<128x128xbf16>
    %cst_43 = arith.constant dense<0.000000e+00> : vector<64x128xf32>
    %64 = tpu.matmul %61, %63, %cst_43 {dimension_numbers = #tpu.dot_dimension_numbers<[1], [0], [0], [1], [0, 0, 1, 1], [], []>} : vector<64x128xbf16>, vector<128x128xbf16>, vector<64x128xf32> -> vector<64x128xf32>
    %65 = arith.addf %59, %64 : vector<64x128xf32>
    %66 = vector.extract_strided_slice %16 {offsets = [2, 2, 0], sizes = [8, 8, 128], strides = [1, 1, 1]} : vector<10x10x128xbf16> to vector<8x8x128xbf16>
    %67 = vector.shape_cast %66 : vector<8x8x128xbf16> to vector<64x128xbf16>
    %c8 = arith.constant 8 : index
    %c0_44 = arith.constant 0 : index
    %c0_45 = arith.constant 0 : index
    %68 = vector.load %arg5[%c8, %c0_44, %c0_45] : memref<9x128x128xbf16, #tpu.memory_space<vmem>>, vector<1x128x128xbf16>
    %69 = vector.shape_cast %68 : vector<1x128x128xbf16> to vector<128x128xbf16>
    %cst_46 = arith.constant dense<0.000000e+00> : vector<64x128xf32>
    %70 = tpu.matmul %67, %69, %cst_46 {dimension_numbers = #tpu.dot_dimension_numbers<[1], [0], [0], [1], [0, 0, 1, 1], [], []>} : vector<64x128xbf16>, vector<128x128xbf16>, vector<64x128xf32> -> vector<64x128xf32>
    %71 = arith.addf %65, %70 : vector<64x128xf32>
    %c0_47 = arith.constant 0 : index
    %c0_48 = arith.constant 0 : index
    %72 = vector.load %arg6[%c0_47, %c0_48] : memref<1x128xf32, #tpu.memory_space<vmem>>, vector<1x128xf32>
    %73 = vector.broadcast %72 : vector<1x128xf32> to vector<64x128xf32>
    %74 = arith.mulf %71, %73 : vector<64x128xf32>
    %c0_49 = arith.constant 0 : index
    %c0_50 = arith.constant 0 : index
    %75 = vector.load %arg7[%c0_49, %c0_50] : memref<1x128xf32, #tpu.memory_space<vmem>>, vector<1x128xf32>
    %76 = vector.broadcast %75 : vector<1x128xf32> to vector<64x128xf32>
    %77 = arith.addf %74, %76 : vector<64x128xf32>
    %c0_51 = arith.constant 0 : index
    %c0_52 = arith.constant 0 : index
    %78 = vector.load %arg8[%c0_51, %c0_52] : memref<64x128xf32, #tpu.memory_space<vmem>>, vector<64x128xf32>
    %79 = arith.addf %77, %78 : vector<64x128xf32>
    %cst_53 = arith.constant 0.000000e+00 : f32
    %80 = vector.broadcast %cst_53 : f32 to vector<64x128xf32>
    %81 = arith.maximumf %79, %80 : vector<64x128xf32>
    %c0_54 = arith.constant 0 : index
    %c0_55 = arith.constant 0 : index
    %82 = vector.load %arg9[%c0_54, %c0_55] : memref<64x128xf32, #tpu.memory_space<vmem>>, vector<64x128xf32>
    tpu.vector_store %arg9[%c0_54, %c0_55], %81 {strides = array<i32>} : memref<64x128xf32, #tpu.memory_space<vmem>>, vector<64x128xf32>,
    return
  }
  func.func @transform_0(%arg0: i32) -> (i32, i32) {
    %c0_i32 = arith.constant 0 : i32
    %c0_i32_0 = arith.constant 0 : i32
    return %arg0, %c0_i32 : i32, i32
  }
  func.func @transform_1(%arg0: i32) -> (i32, i32) {
    %c0_i32 = arith.constant 0 : i32
    %c0_i32_0 = arith.constant 0 : i32
    %c0_i32_1 = arith.constant 0 : i32
    return %c0_i32, %c0_i32_0 : i32, i32
  }
  func.func @transform_2(%arg0: i32) -> (i32, i32) {
    %c0_i32 = arith.constant 0 : i32
    %c0_i32_0 = arith.constant 0 : i32
    %c0_i32_1 = arith.constant 0 : i32
    return %c0_i32, %c0_i32_0 : i32, i32
  }
  func.func @transform_3(%arg0: i32) -> (i32, i32) {
    %c0_i32 = arith.constant 0 : i32
    %c0_i32_0 = arith.constant 0 : i32
    %c0_i32_1 = arith.constant 0 : i32
    return %c0_i32, %c0_i32_0 : i32, i32
  }
  func.func @transform_4(%arg0: i32) -> (i32, i32, i32) {
    %c0_i32 = arith.constant 0 : i32
    %c0_i32_0 = arith.constant 0 : i32
    %c0_i32_1 = arith.constant 0 : i32
    %c0_i32_2 = arith.constant 0 : i32
    return %c0_i32, %c0_i32_0, %c0_i32_1 : i32, i32, i32
  }
  func.func @transform_5(%arg0: i32) -> (i32, i32) {
    %c0_i32 = arith.constant 0 : i32
    %c0_i32_0 = arith.constant 0 : i32
    %c0_i32_1 = arith.constant 0 : i32
    return %c0_i32, %c0_i32_0 : i32, i32
  }
  func.func @transform_6(%arg0: i32) -> (i32, i32) {
    %c0_i32 = arith.constant 0 : i32
    %c0_i32_0 = arith.constant 0 : i32
    %c0_i32_1 = arith.constant 0 : i32
    return %c0_i32, %c0_i32_0 : i32, i32
  }
  func.func @transform_7(%arg0: i32) -> (i32, i32) {
    %c0_i32 = arith.constant 0 : i32
    %c0_i32_0 = arith.constant 0 : i32
    return %arg0, %c0_i32 : i32, i32
  }
  func.func @transform_8(%arg0: i32) -> (i32, i32) {
    %c0_i32 = arith.constant 0 : i32
    %c0_i32_0 = arith.constant 0 : i32
    return %arg0, %c0_i32 : i32, i32
  }
}

</mosaic_0001>

<bundles_post_ra>
// kernel: basic_block_forward.1
= control target key start
LH: loop header
LB: loop body
LE: loop exit
PB: predicated region body
PF: predicated region fallthrough
CT: control target
= control target key end

     0   :  { %s3245_s27 = smov 0   ;;  %s3863_s0 = inlined_call_operand.vmem [shape: bf16[128,128], index: 0, kind: input, shape index: {}]   ;;  %s3864_s1 = inlined_call_operand.vmem [shape: bf16[128,128], index: 1, kind: input, shape index: {}]   ;;  %s3865_s2 = inlined_call_operand.vmem [shape: f32[1,128], index: 2, kind: input, shape index: {}]   ;;  %s3866_s3 = inlined_call_operand.vmem [shape: f32[1,128], index: 3, kind: input, shape index: {}]   ;;  %s3867_s4 = inlined_call_operand.vmem [shape: bf16[9,128,128], index: 4, kind: input, shape index: {}]   ;;  %s3868_s5 = inlined_call_operand.vmem [shape: f32[1,128], index: 5, kind: input, shape index: {}]   ;;  %s3869_s6 = inlined_call_operand.vmem [shape: f32[1,128], index: 6, kind: input, shape index: {}]   ;;  %s3870_s7 = inlined_call_operand.vmem [shape: f32[128,128], index: 7, kind: input, shape index: {}]   ;;  %s3871_s8 = inlined_call_operand.vmem [shape: f32[128,128], index: 8, kind: output, shape index: {}]  }
   0x1 LB: > { %s2383_s28 = sadd.s32 4294967295, %s3197_s27   ;;  %p2387_p0 = scmp.ge.s32.totalorder %s3197_s27, 1  ;;  %s3197_s27 = sphi %s3245_s27, %s18_s27  }
   0x2   : > { %p274_p1 = scmp.lt.s32.totalorder %s3197_s27, 3 }
   0x4   : > { %p275_p2 = pnand %p2387_p0, %p274_p1 }
   0x5   : > { %v3098_v0 = vld [vmem:[%s3864_s1] sm:$0xff] (!%p275_p2)   ;;  %s2388_s9 = sshll.u32 (!%p275_p2), %s2383_s28, 3  ;;  %v3099_v1 = vld [vmem:[%s3864_s1 + $0x8] sm:$0xff] (!%p275_p2)   ;;  %v3100_v2 = vld [vmem:[%s3864_s1 + $0x10] sm:$0xff] (!%p275_p2)   ;;  %v3199_v14 = vmov (!%p275_p2), 0   ;;  %vm664_vm0 = vcmask (!%p275_p2), 1043456  }
   0x6   : > { %278 = sbr.rel (%p275_p2) target bundleno = 658 (0x292), region = 52  ;;  %p314_p3 = scmp.lt.s32.totalorder (!%p275_p2), %s2388_s9, 15  ;;  %2785 = vmatprep.subr.bf16.mxu0 (!%p275_p2), %v3098_v0  ;;  %v3101_v3 = vld [vmem:[%s3864_s1 + $0x18] sm:$0xff] (!%p275_p2)   ;;  %v3102_v5 = vld [vmem:[%s3864_s1 + $0x20] sm:$0xff] (!%p275_p2)   ;;  %v3103_v6 = vld [vmem:[%s3864_s1 + $0x28] sm:$0xff] (!%p275_p2)   ;;  %vm670_vm2 = vcmask (!%p275_p2), 1040384  }
   0x7   : > { %2786 = vmatpush3.bf16.msra.mxu0 (!%p275_p2), %v3098_v0  ;;  %v3104_v7 = vld [vmem:[%s3864_s1 + $0x30] sm:$0xff] (!%p275_p2)   ;;  %v3105_v8 = vld [vmem:[%s3864_s1 + $0x38] sm:$0xff] (!%p275_p2)   ;;  %v3110_v12 = vld [vmem:[%s3867_s4 + $0x40] sm:$0xff] (!%p275_p2)   ;;  %537 = vst [vmem:[#allocation2 + $0x18] sm:$0xf] (!%p275_p2), %v3199_v14  ;;  %vm1160_vm9 = vcmask (!%p275_p2), 1042432  }
   0x8   : > { %2787 = vmatprep.subr.bf16.mxu0 (!%p275_p2), %v3099_v1  ;;  %v3111_v13 = vld [vmem:[%s3867_s4 + $0x100] sm:$0xff] (!%p275_p2)   ;;  %538 = vst [vmem:[#allocation2 + $0x1c] sm:$0x1] (!%p275_p2), %v3199_v14  ;;  %531 = vst [vmem:[#allocation2] sm:$0xf] (!%p275_p2), %v3199_v14  ;;  %v3112_v15 = vld [vmem:[%s3867_s4 + $0x48] sm:$0xff] (!%p275_p2)  }
   0x9   : > { %532 = vst [vmem:[#allocation2 + $0x4] sm:$0x1] (!%p275_p2), %v3199_v14  ;;  %533 = vst [vmem:[#allocation2 + $0x8] sm:$0xf] (!%p275_p2), %v3199_v14  ;;  %2905 = vmatprep.subr.bf16.mxu1 (!%p275_p2), %v3111_v13  ;;  %v3113_v16 = vld [vmem:[%s3867_s4 + $0x108] sm:$0xff] (!%p275_p2)   ;;  %v3114_v17 = vld [vmem:[%s3867_s4 + $0x50] sm:$0xff] (!%p275_p2)  }
   0xa   : > { %534 = vst [vmem:[#allocation2 + $0xc] sm:$0x1] (!%p275_p2), %v3199_v14  ;;  %535 = vst [vmem:[#allocation2 + $0x10] sm:$0xf] (!%p275_p2), %v3199_v14  ;;  %2906 = vmatpush3.bf16.msra.mxu1 (!%p275_p2), %v3111_v13  ;;  %v3115_v18 = vld [vmem:[%s3867_s4 + $0x110] sm:$0xff] (!%p275_p2)   ;;  %v3116_v19 = vld [vmem:[%s3867_s4 + $0x58] sm:$0xff] (!%p275_p2)  }
   0xb   : > { %2788 = vmatpush3.bf16.msra.mxu0 (!%p275_p2), %v3099_v1  ;;  %536 = vst [vmem:[#allocation2 + $0x14] sm:$0x1] (!%p275_p2), %v3199_v14  ;;  %539 = vst [vmem:[#allocation2 + $0x20] sm:$0xf] (!%p275_p2), %v3199_v14  ;;  %2907 = vmatprep.subr.bf16.mxu1 (!%p275_p2), %v3113_v16  ;;  %v3117_v20 = vld [vmem:[%s3867_s4 + $0x118] sm:$0xff] (!%p275_p2)   ;;  %v3118_v21 = vld [vmem:[%s3867_s4 + $0x60] sm:$0xff] (!%p275_p2)  }
   0xc   : > { %2789 = vmatprep.subr.bf16.mxu0 (!%p275_p2), %v3100_v2  ;;  %540 = vst [vmem:[#allocation2 + $0x24] sm:$0x1] (!%p275_p2), %v3199_v14  ;;  %541 = vst [vmem:[#allocation2 + $0x28] sm:$0xf] (!%p275_p2), %v3199_v14  ;;  %v3119_v22 = vld [vmem:[%s3867_s4 + $0x120] sm:$0xff] (!%p275_p2)   ;;  %v3120_v23 = vld [vmem:[%s3867_s4 + $0x68] sm:$0xff] (!%p275_p2)  }
   0xd   : > { %s3881_s9 = smov (!%p314_p3, %s2388_s9), 15  ;;  %542 = vst [vmem:[#allocation2 + $0x2c] sm:$0x1] %v3199_v14  ;;  %543 = vst [vmem:[#allocation2 + $0x30] sm:$0xf] %v3199_v14  ;;  %v3121_v24 = vld [vmem:[%s3867_s4 + $0x128] sm:$0xff]  }
   0xe   : > { %s2389_s14 = sshll.u32 %s3881_s9, 2  ;;  %544 = vst [vmem:[#allocation2 + $0x34] sm:$0x1] %v3199_v14  ;;  %545 = vst [vmem:[#allocation2 + $0x38] sm:$0xf] %v3199_v14  ;;  %2908 = vmatpush3.bf16.msra.mxu1 %v3113_v16  ;;  %v3122_v25 = vld [vmem:[%s3867_s4 + $0x70] sm:$0xff]  }
   0xf   : > { %s317_s17 = scalar_lea.vmem %s3863_s0, %s2389_s14  ;;  %2790 = vmatpush3.bf16.msra.mxu0 %v3100_v2  ;;  %546 = vst [vmem:[#allocation2 + $0x3c] sm:$0x1] %v3199_v14  ;;  %547 = vst [vmem:[#allocation2 + $0x40] sm:$0xf] %v3199_v14  ;;  %2909 = vmatprep.subr.bf16.mxu1 %v3115_v18  ;;  %v3123_v26 = vld [vmem:[%s3867_s4 + $0x130] sm:$0xff]   ;;  %v3124_v27 = vld [vmem:[%s3867_s4 + $0x78] sm:$0xff]  }
  0x10   : > { %v3106_v4 = vld [vmem:[%s317_s17] sm:$0xff]   ;;  %2791 = vmatprep.subr.bf16.mxu0 %v3101_v3  ;;  %v3107_v9 = vld [vmem:[%s317_s17 + $0x8] sm:$0xff]   ;;  %v3108_v10 = vld [vmem:[%s317_s17 + $0x10] sm:$0xff]   ;;  %548 = vst [vmem:[#allocation2 + $0x44] sm:$0x1] %v3199_v14  ;;  %vm1161_vm10 = vcmask 1046532  }
  0x11   : > { %2801 = vmatprep.mubr.bf16.mxu0 %v3106_v4  ;;  %v3109_v11 = vld [vmem:[%s317_s17 + $0x18] sm:$0xff]   ;;  %549 = vst [vmem:[#allocation2 + $0x48] sm:$0xf] %v3199_v14  ;;  %550 = vst [vmem:[#allocation2 + $0x4c] sm:$0x1] %v3199_v14  ;;  %v3334_v29 = vld [vmem:[%s3867_s4] sm:$0xff]  }
  0x12   : > { %2910 = vmatpush3.bf16.msra.mxu1 %v3115_v18  ;;  %v3125_v28 = vld [vmem:[%s3867_s4 + $0x138] sm:$0xff]   ;;  %v3340_v30 = vld [vmem:[%s3867_s4 + $0x140] sm:$0xff]   ;;  %vm665_vm1 = vsmask.f32 7938  ;;  %vm671_vm3 = vsmask.f32 256  ;;  %vm3553_vm11 = vmor %vm1160_vm9, %vm1161_vm10 }
  0x13   : > { %2792 = vmatpush3.bf16.msra.mxu0 %v3101_v3  ;;  %2911 = vmatprep.subr.bf16.mxu1 %v3117_v20  ;;  %v3343_v31 = vld [vmem:[#allocation2] sm:$0xf]  ;;  %v3369_v54 = vld [vmem:[#allocation2 + $0x4] sm:$0x1]  ;;  %v682_v1 = vld [vmem:[#allocation2 + $0x18] sm:$0xf] }
  0x14   : > { %2793 = vmatprep.subr.bf16.mxu0 %v3102_v5  ;;  %v3348_v32 = vld [vmem:[%s3865_s2] ss:$0 sm:$0xff]  ;;  %v758_v35 = vshrl.u32 %v3343_v31, 16  ;;  %v761_v36 = vshll.u32 %v3343_v31, 16  ;;  %v767_v59 = vshll.u32 %v3369_v54, 16  ;;  %vm3378_vm6 = vmand %vm664_vm0, %vm665_vm1  ;;  %s2391_s16 = sshll.u32 %s3881_s9, 3 }
  0x15   : > { %v3353_v34 = vld [vmem:[%s3866_s3] ss:$0 sm:$0xff]  ;;  %v685_v2 = vld [vmem:[#allocation2 + $0x1c] sm:$0x1]  ;;  %vm754_vm4 = vsmask.f32 3328  ;;  %vm3385_vm7 = vmand %vm670_vm2, %vm671_vm3  ;;  %s3834_s21 = scalar_lea.vmem %s3870_s7, %s2391_s16  ;;  %s3846_s25 = scalar_lea.vmem %s3871_s8, %s2391_s16 }
  0x16   : > { %2912 = vmatpush3.bf16.msra.mxu1 %v3117_v20  ;;  %v3363_v46 = vrot.slane %v758_v35, 4  ;;  %v3365_v47 = vrot.slane %v761_v36, 5  ;;  %vm755_vm5 = vsmask.f32 7440 }
  0x17   : > { %2794 = vmatpush3.bf16.msra.mxu0 %v3102_v5  ;;  %2913 = vmatprep.subr.bf16.mxu1 %v3119_v22  ;;  %vm3421_vm8 = vmor %vm754_vm4, %vm755_vm5 }
  0x18   : > { %2795 = vmatprep.subr.bf16.mxu0 %v3103_v6  ;;  %v764_v58 = vor.u32 %v3365_v47, %v3363_v46 }
  0x1a   : > { %2914 = vmatpush3.bf16.msra.mxu1 %v3119_v22 }
  0x1b   : > { %2796 = vmatpush3.bf16.msra.mxu0 %v3103_v6  ;;  %2915 = vmatprep.subr.bf16.mxu1 %v3121_v24 }
  0x1c   : > { %2797 = vmatprep.subr.bf16.mxu0 %v3104_v7 }
  0x1e   : > { %2916 = vmatpush3.bf16.msra.mxu1 %v3121_v24  ;;  %v688_v24 = vld [vmem:[#allocation2 + $0x20] sm:$0xf] }
  0x1f   : > { %2798 = vmatpush3.bf16.msra.mxu0 %v3104_v7  ;;  %2917 = vmatprep.subr.bf16.mxu1 %v3123_v26 }
  0x20   : > { %2799 = vmatprep.subr.bf16.mxu0 %v3105_v8 }
  0x22   : > { %2918 = vmatpush3.bf16.msra.mxu1 %v3123_v26 }
  0x23   : > { %2800 = vmatpush3.bf16.msra.mxu0 %v3105_v8  ;;  %2919 = vmatprep.subr.bf16.mxu1 %v3125_v28 }
  0x24   : > { %2809 = vmatprep.subr.bf16.mxu0 %v3110_v12 }
  0x26   : > { %2802 = vmatmul.mubr.bf16.vlgmr.msra.gmra.mrb[0].mxu0 %v3107_v9  ;;  %2920 = vmatpush3.bf16.msra.mxu1 %v3125_v28  ;;  %v691_v28 = vld [vmem:[#allocation2 + $0x24] sm:$0x1] }
  0x27   : > { %2805 = vmatprep.mubr.bf16.mxu0 %v3108_v10  ;;  %2810 = vmatpush3.bf16.msra.mxu0 %v3110_v12  ;;  %v667_v10 = vld [vmem:[#allocation2 + $0x8] sm:$0xf] }
  0x28   : > { %2811 = vmatprep.subr.bf16.mxu0 %v3112_v15  ;;  %2929 = vmatprep.subr.bf16.mxu1 %v3340_v30 }
  0x2b   : > { %2812 = vmatpush3.bf16.msra.mxu0 %v3112_v15 }
  0x2c   : > { %2813 = vmatprep.subr.bf16.mxu0 %v3114_v17 }
  0x2e   : > { %2806 = vmatmul.mubr.bf16.gmra.mrb[4].mxu0 %v3109_v11 }
  0x2f   : > { %2814 = vmatpush3.bf16.msra.mxu0 %v3114_v17  ;;  %v673_v17 = vld [vmem:[#allocation2 + $0xc] sm:$0x1] }
  0x30   : > { %2815 = vmatprep.subr.bf16.mxu0 %v3116_v19 }
  0x33   : > { %2816 = vmatpush3.bf16.msra.mxu0 %v3116_v19 }
  0x34   : > { %2817 = vmatprep.subr.bf16.mxu0 %v3118_v21 }
  0x37   : > { %2818 = vmatpush3.bf16.msra.mxu0 %v3118_v21 }
  0x38   : > { %2819 = vmatprep.subr.bf16.mxu0 %v3120_v23 }
  0x3b   : > { %2820 = vmatpush3.bf16.msra.mxu0 %v3120_v23 }
  0x3c   : > { %2821 = vmatprep.subr.bf16.mxu0 %v3122_v25 }
  0x3f   : > { %2822 = vmatpush3.bf16.msra.mxu0 %v3122_v25 }
  0x40   : > { %2823 = vmatprep.subr.bf16.mxu0 %v3124_v27 }
  0x43   : > { %2824 = vmatpush3.bf16.msra.mxu0 %v3124_v27 }
  0x44   : > { %2833 = vmatprep.subr.bf16.mxu0 %v3334_v29 }
  0xf9   : > { %v2803_v33 = vpop.f32.mrb[0].mxu0 }
  0xfa   : > { %v502_v37 = vmul.f32 %v2803_v33, %v3348_v32  ;;  %v462_v38 = vpop.f32.mrb[1].mxu0 }
  0xfb   : > { %v500_v39 = vmul.f32 %v3348_v32, %v462_v38  ;;  %v2804_v40 = vpop.f32.mrb[2].mxu0 }
  0xfc   : > { %v517_v41 = vadd.f32 %v3353_v34, %v502_v37  ;;  %v503_v42 = vmul.f32 %v2804_v40, %v3348_v32  ;;  %v465_v43 = vpop.f32.mrb[3].mxu0  ;;  %v676_v40 = vld [vmem:[#allocation2 + $0x10] sm:$0xf] }
  0xfd   : > { %v515_v44 = vadd.f32 %v3353_v34, %v500_v39  ;;  %v501_v45 = vmul.f32 %v3348_v32, %v465_v43 }
  0xfe   : > { %v525_v48 = vmax.f32 %v517_v41, 0.0  ;;  %v518_v49 = vadd.f32 %v3353_v34, %v503_v42  ;;  %v679_v41 = vld [vmem:[#allocation2 + $0x14] sm:$0x1] }
  0xff   : > { %v523_v50 = vmax.f32 %v515_v44, 0.0  ;;  %v516_v51 = vadd.f32 %v3353_v34, %v501_v45 }
 0x100   : > { %v2659_v52 = vpack.c.bf16 %v525_v48, %v525_v48  ;;  %v526_v53 = vmax.f32 %v518_v49, 0.0 }
 0x101   : > { %v2657_v55 = vpack.c.bf16 %v523_v50, %v523_v50  ;;  %v524_v56 = vmax.f32 %v516_v51, 0.0  ;;  %v2807_v57 = vpop.f32.mrb[4].mxu0 }
 0x102   : > { %v600_v60 = vshrl.u32 %v2659_v52, 16  ;;  %v603_v61 = vshll.u32 %v2659_v52, 16  ;;  %v2660_v62 = vpack.c.bf16 %v526_v53, %v526_v53  ;;  %v506_v63 = vmul.f32 %v2807_v57, %v3348_v32  ;;  %v478_v0 = vpop.f32.mrb[5].mxu0 }
 0x103   : > { %v584_v3 = vshrl.u32 %v2657_v55, 16  ;;  %v587_v4 = vshll.u32 %v2657_v55, 16  ;;  %v2658_v5 = vpack.c.bf16 %v524_v56, %v524_v56  ;;  %v504_v6 = vmul.f32 %v3348_v32, %v478_v0  ;;  %v2808_v7 = vpop.f32.mrb[6].mxu0 }
 0x104   : > { %v602_v8 = vrot.slane %v600_v60, 7  ;;  %v608_v11 = vshrl.u32 %v2660_v62, 16  ;;  %v611_v12 = vshll.u32 %v2660_v62, 16  ;;  %v521_v13 = vadd.f32 %v3353_v34, %v506_v63  ;;  %v481_v14 = vpop.f32.mrb[7].mxu0 }
 0x105   : > { %v586_v16 = vrot.slane %v584_v3, 7  ;;  %v592_v18 = vshrl.u32 %v2658_v5, 16  ;;  %v595_v19 = vshll.u32 %v2658_v5, 16  ;;  %v519_v20 = vadd.f32 %v3353_v34, %v504_v6  ;;  %v706_v3 = vld [vmem:[#allocation2 + $0x38] sm:$0xf]  ;;  %v3187_v6 = vld [vmem:[%s3867_s4 + $0x220] sm:$0xff]  }
 0x106   : > { %v605_v21 = vor.u32 %v603_v61, %v602_v8  ;;  %v606_v22 = vrot.slane %v602_v8, 4  ;;  %v610_v23 = vrot.slane %v608_v11, 7  ;;  %v529_v25 = vmax.f32 %v521_v13, 0.0  ;;  %v694_v5 = vld [vmem:[#allocation2 + $0x28] sm:$0xf] }
 0x107   : > { %v589_v26 = vor.u32 %v587_v4, %v586_v16  ;;  %v590_v27 = vrot.slane %v586_v16, 4  ;;  %v594_v33 = vrot.slane %v592_v18, 7  ;;  %v527_v35 = vmax.f32 %v519_v20, 0.0 }
 0x108   : > { %v683_v36 = vsel %vm3378_vm6, %v605_v21, %v682_v1  ;;  %v686_v37 = vsel %vm3385_vm7, %v606_v22, %v685_v2  ;;  %v613_v38 = vor.u32 %v611_v12, %v610_v23  ;;  %v614_v39 = vrot.slane %v610_v23, 4 }
 0x109   : > { %684 = vst [vmem:[#allocation2 + $0x18] sm:$0xf] %v683_v36  ;;  %687 = vst [vmem:[#allocation2 + $0x1c] sm:$0x1] %v686_v37  ;;  %v668_v42 = vsel %vm3378_vm6, %v589_v26, %v667_v10  ;;  %v674_v43 = vsel %vm3385_vm7, %v590_v27, %v673_v17  ;;  %v597_v44 = vor.u32 %v595_v19, %v594_v33  ;;  %v598_v45 = vrot.slane %v594_v33, 4 }
 0x10a   : > { %669 = vst [vmem:[#allocation2 + $0x8] sm:$0xf] %v668_v42  ;;  %675 = vst [vmem:[#allocation2 + $0xc] sm:$0x1] %v674_v43  ;;  %v689_v48 = vsel %vm3378_vm6, %v613_v38, %v688_v24  ;;  %v692_v49 = vsel %vm3385_vm7, %v614_v39, %v691_v28  ;;  %v2663_v50 = vpack.c.bf16 %v529_v25, %v529_v25  ;;  %v3413_v1 = vrot.slane %v764_v58, 4 }
 0x10b   : > { %v2661_v51 = vpack.c.bf16 %v527_v35, %v527_v35  ;;  %690 = vst [vmem:[#allocation2 + $0x20] sm:$0xf] %v689_v48  ;;  %693 = vst [vmem:[#allocation2 + $0x24] sm:$0x1] %v692_v49  ;;  %v677_v52 = vsel %vm3378_vm6, %v597_v44, %v676_v40  ;;  %v680_v53 = vsel %vm3385_vm7, %v598_v45, %v679_v41  ;;  %v3417_v2 = vrot.slane %v767_v59, 5 }
 0x10c   : > { %v507_v55 = vmul.f32 %v2808_v7, %v3348_v32  ;;  %v505_v56 = vmul.f32 %v3348_v32, %v481_v14  ;;  %678 = vst [vmem:[#allocation2 + $0x10] sm:$0xf] %v677_v52  ;;  %681 = vst [vmem:[#allocation2 + $0x14] sm:$0x1] %v680_v53  ;;  %v632_v57 = vshrl.u32 %v2663_v50, 16  ;;  %v635_v60 = vshll.u32 %v2663_v50, 16 }
 0x10d   : > { %v616_v61 = vshrl.u32 %v2661_v51, 16  ;;  %v619_v62 = vshll.u32 %v2661_v51, 16  ;;  %v697_v7 = vld [vmem:[#allocation2 + $0x2c] sm:$0x1]  ;;  %v770_v17 = vsel %vm3421_vm8, %v3413_v1, %v3417_v2  ;;  %v712_v28 = vld [vmem:[#allocation2 + $0x40] sm:$0xf] }
 0x10e   : > { %v522_v63 = vadd.f32 %v3353_v34, %v507_v55  ;;  %v520_v0 = vadd.f32 %v3353_v34, %v505_v56  ;;  %v634_v32 = vrot.slane %v632_v57, 7  ;;  %v709_v34 = vld [vmem:[#allocation2 + $0x3c] sm:$0x1]  ;;  %v700_v33 = vld [vmem:[#allocation2 + $0x30] sm:$0xf] }
 0x10f   : > { %v618_v4 = vrot.slane %v616_v61, 7  ;;  %v715_v41 = vld [vmem:[#allocation2 + $0x44] sm:$0x1]  ;;  %v703_v45 = vld [vmem:[#allocation2 + $0x34] sm:$0x1] }
 0x110   : > { %v530_v8 = vmax.f32 %v522_v63, 0.0  ;;  %v528_v46 = vmax.f32 %v520_v0, 0.0  ;;  %v637_v47 = vor.u32 %v635_v60, %v634_v32  ;;  %v638_v58 = vrot.slane %v634_v32, 4  ;;  %v3425_v59 = vld [vmem:[#allocation2 + $0x18] sm:$0xf] }
 0x111   : > { %v621_v10 = vor.u32 %v619_v62, %v618_v4  ;;  %v622_v11 = vrot.slane %v618_v4, 4  ;;  %v3427_v14 = vld [vmem:[#allocation2 + $0x8] sm:$0xf]  ;;  %v3429_v16 = vld [vmem:[#allocation2 + $0xc] sm:$0x1]  ;;  %v800_v18 = vshrl.u32 %v3425_v59, 16 }
 0x112   : > { %v2664_v12 = vpack.c.bf16 %v530_v8, %v530_v8  ;;  %v2662_v13 = vpack.c.bf16 %v528_v46, %v528_v46  ;;  %v707_v19 = vsel %vm3378_vm6, %v637_v47, %v706_v3  ;;  %v710_v20 = vsel %vm3385_vm7, %v638_v58, %v709_v34  ;;  %v3455_v57 = vld [vmem:[#allocation2 + $0x1c] sm:$0x1]  ;;  %v3457_v60 = vld [vmem:[#allocation2 + $0x20] sm:$0xf]  ;;  %v3459_v32 = vld [vmem:[#allocation2 + $0x24] sm:$0x1] }
 0x113   : > { %v695_v21 = vsel %vm3378_vm6, %v621_v10, %v694_v5  ;;  %v698_v22 = vsel %vm3385_vm7, %v622_v11, %v697_v7  ;;  %708 = vst [vmem:[#allocation2 + $0x38] sm:$0xf] %v707_v19  ;;  %711 = vst [vmem:[#allocation2 + $0x3c] sm:$0x1] %v710_v20  ;;  %v3444_v27 = vld [vmem:[#allocation2 + $0x10] sm:$0xf] }
 0x114   : > { %696 = vst [vmem:[#allocation2 + $0x28] sm:$0xf] %v695_v21  ;;  %699 = vst [vmem:[#allocation2 + $0x2c] sm:$0x1] %v698_v22  ;;  %v640_v23 = vshrl.u32 %v2664_v12, 16  ;;  %v643_v24 = vshll.u32 %v2664_v12, 16 }
 0x115   : > { %v624_v25 = vshrl.u32 %v2662_v13, 16  ;;  %v627_v26 = vshll.u32 %v2662_v13, 16  ;;  %v772_v35 = vshrl.u32 %v3427_v14, 16  ;;  %v775_v36 = vshll.u32 %v3427_v14, 16  ;;  %v3449_v38 = vld [vmem:[#allocation2 + $0x14] sm:$0x1] }
 0x116   : > { %v781_v37 = vshll.u32 %v3429_v16, 16  ;;  %v786_v39 = vshrl.u32 %v3444_v27, 16  ;;  %v642_v40 = vrot.slane %v640_v23, 7  ;;  %v789_v43 = vshll.u32 %v3444_v27, 16 }
 0x117   : > { %v626_v42 = vrot.slane %v624_v25, 7  ;;  %v803_v44 = vshll.u32 %v3425_v59, 16  ;;  %v774_v48 = vrot.slane %v772_v35, 4  ;;  %v777_v49 = vrot.slane %v775_v36, 5 }
 0x118   : > { %v788_v50 = vrot.slane %v786_v39, 4  ;;  %v795_v51 = vshll.u32 %v3449_v38, 16  ;;  %v645_v52 = vor.u32 %v643_v24, %v642_v40  ;;  %v646_v53 = vrot.slane %v642_v40, 4 }
 0x119   : > { %v629_v55 = vor.u32 %v627_v26, %v626_v42  ;;  %v630_v56 = vrot.slane %v626_v42, 4  ;;  %v778_v61 = vor.u32 %v777_v49, %v774_v48  ;;  %v783_v62 = vrot.slane %v781_v37, 5 }
 0x11a   : > { %v791_v63 = vrot.slane %v789_v43, 5  ;;  %v802_v0 = vrot.slane %v800_v18, 4  ;;  %v713_v3 = vsel %vm3378_vm6, %v645_v52, %v712_v28  ;;  %v716_v4 = vsel %vm3385_vm7, %v646_v53, %v715_v41  ;;  %v3477_v20 = vld [vmem:[#allocation2 + $0x38] sm:$0xf]  ;;  %v3497_v42 = vld [vmem:[#allocation2 + $0x3c] sm:$0x1] }
 0x11b   : > { %v701_v5 = vsel %vm3378_vm6, %v629_v55, %v700_v33  ;;  %v704_v34 = vsel %vm3385_vm7, %v630_v56, %v703_v45  ;;  %714 = vst [vmem:[#allocation2 + $0x40] sm:$0xf] %v713_v3  ;;  %717 = vst [vmem:[#allocation2 + $0x44] sm:$0x1] %v716_v4  ;;  %v779_v7 = vrot.slane %v778_v61, 4  ;;  %v805_v46 = vrot.slane %v803_v44, 5 }
 0x11c   : > { %702 = vst [vmem:[#allocation2 + $0x30] sm:$0xf] %v701_v5  ;;  %705 = vst [vmem:[#allocation2 + $0x34] sm:$0x1] %v704_v34  ;;  %v792_v8 = vor.u32 %v791_v63, %v788_v50  ;;  %v809_v47 = vshll.u32 %v3455_v57, 16  ;;  %v797_v58 = vrot.slane %v795_v51, 5 }
 0x11d   : > { %v814_v10 = vshrl.u32 %v3457_v60, 16  ;;  %v817_v11 = vshll.u32 %v3457_v60, 16  ;;  %v823_v9 = vshll.u32 %v3459_v32, 16  ;;  %v3473_v12 = vld [vmem:[#allocation2 + $0x28] sm:$0xf]  ;;  %v784_v15 = vsel %vm3421_vm8, %v779_v7, %v783_v62 }
 0x11e   : > { %v793_v13 = vrot.slane %v792_v8, 4  ;;  %v806_v18 = vor.u32 %v805_v46, %v802_v0  ;;  %v811_v19 = vrot.slane %v809_v47, 5  ;;  %v2432_v21 = vcombine.low %v770_v17, %v784_v15  ;;  %v3486_v28 = vld [vmem:[#allocation2 + $0x2c] sm:$0x1]  ;;  %v3130_v46 = vld [vmem:[%s3867_s4 + $0x10] sm:$0xff]  }
 0x11f   : > { %v816_v22 = vrot.slane %v814_v10, 4  ;;  %v819_v23 = vrot.slane %v817_v11, 5  ;;  %v825_v24 = vrot.slane %v823_v9, 5  ;;  %v828_v33 = vshrl.u32 %v3473_v12, 16  ;;  %v3128_v17 = vld [vmem:[%s3867_s4 + $0x8] sm:$0xff]  }
 0x120   : > { %v798_v25 = vsel %vm3421_vm8, %v793_v13, %v797_v58  ;;  %v807_v26 = vrot.slane %v806_v18, 4  ;;  %v831_v35 = vshll.u32 %v3473_v12, 16  ;;  %2825 = vmatprep.mubr.bf16.mxu0 %v2432_v21  ;;  %v837_v39 = vshll.u32 %v3486_v28, 16  ;;  %v3129_v5 = vld [vmem:[%s3867_s4 + $0x148] sm:$0xff]  }
 0x121   : > { %v2536_v36 = vcombine.low %v784_v15, %v798_v25  ;;  %v820_v37 = vor.u32 %v819_v23, %v816_v22  ;;  %v856_v1 = vshrl.u32 %v3477_v20, 16  ;;  %v830_v40 = vrot.slane %v828_v33, 4  ;;  %v3131_v23 = vld [vmem:[%s3867_s4 + $0x150] sm:$0xff]  }
 0x122   : > { %v812_v2 = vsel %vm3421_vm8, %v807_v26, %v811_v19  ;;  %v833_v41 = vrot.slane %v831_v35, 5  ;;  %v859_v43 = vshll.u32 %v3477_v20, 16  ;;  %v839_v48 = vrot.slane %v837_v39, 5  ;;  %v3509_v56 = vld [vmem:[#allocation2 + $0x40] sm:$0xf] }
 0x123   : > { %v3500_v44 = vcombine.low %v798_v25, %v812_v2  ;;  %2921 = vmatprep.mubr.bf16.mxu1 %v2536_v36  ;;  %v821_v45 = vrot.slane %v820_v37, 4  ;;  %v3502_v49 = vld [vmem:[#allocation2 + $0x30] sm:$0xf]  ;;  %v3504_v50 = vld [vmem:[#allocation2 + $0x34] sm:$0x1]  ;;  %v858_v62 = vrot.slane %v856_v1, 4 }
 0x124   : > { %v834_v51 = vor.u32 %v833_v41, %v830_v40  ;;  %v842_v52 = vshrl.u32 %v3502_v49, 16  ;;  %v845_v53 = vshll.u32 %v3502_v49, 16  ;;  %v851_v55 = vshll.u32 %v3504_v50, 16  ;;  %v3515_v3 = vld [vmem:[#allocation2 + $0x44] sm:$0x1]  ;;  %v3133_v37 = vld [vmem:[%s3867_s4 + $0x18] sm:$0xff]  }
 0x125   : > { %2826 = vmatmul.mubr.bf16.vlgmr.msra.gmra.mrb[8].mxu0 %v3500_v44  ;;  %v826_v61 = vsel %vm3421_vm8, %v821_v45, %v825_v24  ;;  %v861_v63 = vrot.slane %v859_v43, 5  ;;  %v865_v0 = vshll.u32 %v3497_v42, 16  ;;  %v1498_v11 = vshrl.u32 %v3509_v56, 16  ;;  %v3134_v43 = vld [vmem:[%s3867_s4 + $0x158] sm:$0xff]   ;;  %v3135_v45 = vld [vmem:[%s3867_s4 + $0x20] sm:$0xff]  }
 0x126   : > { %2834 = vmatpush3.bf16.msra.mxu0 %v3334_v29  ;;  %v2537_v4 = vcombine.low %v812_v2, %v826_v61  ;;  %v835_v34 = vrot.slane %v834_v51, 4  ;;  %v844_v7 = vrot.slane %v842_v52, 4  ;;  %v847_v8 = vrot.slane %v845_v53, 5 }
 0x127   : > { %2835 = vmatprep.subr.bf16.mxu0 %v3128_v17  ;;  %v853_v47 = vrot.slane %v851_v55, 5  ;;  %v862_v58 = vor.u32 %v861_v63, %v858_v62  ;;  %v867_v10 = vrot.slane %v865_v0, 5  ;;  %v1501_v15 = vshll.u32 %v3509_v56, 16  ;;  %v3136_v55 = vld [vmem:[%s3867_s4 + $0x160] sm:$0xff]  }
 0x128   : > { %2922 = vmatmul.mubr.bf16.vlgmr.msra.gmra.mrb[0].mxu1 %v2537_v4  ;;  %v840_v29 = vsel %vm3421_vm8, %v835_v34, %v839_v48  ;;  %v848_v9 = vor.u32 %v847_v8, %v844_v7  ;;  %v1507_v13 = vshll.u32 %v3515_v3, 16  ;;  %v1500_v21 = vrot.slane %v1498_v11, 4  ;;  %v3139_v34 = vld [vmem:[%s3867_s4 + $0x30] sm:$0xff]   ;;  %v3141_v8 = vld [vmem:[%s3867_s4 + $0x38] sm:$0xff]  }
 0x129   : > { %2930 = vmatpush3.bf16.msra.mxu1 %v3340_v30  ;;  %v3530_v18 = vcombine.low %v826_v61, %v840_v29  ;;  %v863_v19 = vrot.slane %v862_v58, 4  ;;  %v1503_v24 = vrot.slane %v1501_v15, 5  ;;  %v2458_v30 = vrot.slane %v3444_v27, 9  ;;  %v3137_v61 = vld [vmem:[%s3867_s4 + $0x28] sm:$0xff]   ;;  %v3140_v7 = vld [vmem:[%s3867_s4 + $0x170] sm:$0xff]  }
 0x12a   : > { %2836 = vmatpush3.bf16.msra.mxu0 %v3128_v17  ;;  %2931 = vmatprep.subr.bf16.mxu1 %v3129_v5  ;;  %v849_v22 = vrot.slane %v848_v9, 4  ;;  %v1173_v26 = vrot.slane %v3449_v38, 5  ;;  %v1509_v36 = vrot.slane %v1507_v13, 5  ;;  %v2457_v2 = vrot.slane %v3427_v14, 9 }
 0x12b   : > { %2829 = vmatprep.mubr.bf16.mxu0 %v3530_v18  ;;  %2837 = vmatprep.subr.bf16.mxu0 %v3130_v46  ;;  %v868_v25 = vsel %vm3421_vm8, %v863_v19, %v867_v10  ;;  %v1504_v35 = vor.u32 %v1503_v24, %v1500_v21  ;;  %v1169_v17 = vrot.slane %v3429_v16, 5  ;;  %v2444_v38 = vcombine.low %v3343_v31, %v3427_v14  ;;  %v3144_v10 = vld [vmem:[%s3867_s4 + $0x80] sm:$0xff]  }
 0x12c   : > { %v854_v33 = vsel %vm3421_vm8, %v849_v22, %v853_v47  ;;  %v3563_v16 = vsel %vm3553_vm11, %v2458_v30, %v1173_v26  ;;  %v2508_v62 = vcombine.low %v3427_v14, %v3444_v27  ;;  %v2509_v63 = vcombine.low %v3425_v59, %v3457_v60  ;;  %v3173_v14 = vld [vmem:[%s3867_s4 + $0x1e0] sm:$0xff]  }
 0x12d   : > { %2932 = vmatpush3.bf16.msra.mxu1 %v3129_v5  ;;  %v3545_v39 = vcombine.low %v854_v33, %v868_v25  ;;  %v2538_v1 = vcombine.low %v840_v29, %v854_v33  ;;  %v1505_v40 = vrot.slane %v1504_v35, 4  ;;  %v3575_v52 = vsel %vm3553_vm11, %v2457_v2, %v1169_v17  ;;  %v3138_v5 = vld [vmem:[%s3867_s4 + $0x168] sm:$0xff]  }
 0x12e   : > { %2838 = vmatpush3.bf16.msra.mxu0 %v3130_v46  ;;  %2933 = vmatprep.subr.bf16.mxu1 %v3131_v23  ;;  %v2565_v53 = vcombine.low %v3575_v52, %v3563_v16  ;;  %v2510_v0 = vcombine.low %v3473_v12, %v3502_v49  ;;  %v2511_v4 = vcombine.low %v3477_v20, %v3509_v56  ;;  %v3142_v46 = vld [vmem:[%s3867_s4 + $0x178] sm:$0xff]   ;;  %v1181_v47 = vrot.slane %v3459_v32, 5  ;;  %v3148_v33 = vld [vmem:[%s3867_s4 + $0x188] sm:$0xff]  }
 0x12f   : > { %2830 = vmatmul.mubr.bf16.gmra.mrb[12].mxu0 %v3545_v39  ;;  %2925 = vmatprep.mubr.bf16.mxu1 %v2538_v1  ;;  %v3570_v48 = vsel %vm3421_vm8, %v1505_v40, %v1509_v36  ;;  %v2460_v58 = vrot.slane %v3457_v60, 9  ;;  %v2462_v11 = vrot.slane %v3502_v49, 9  ;;  %v1189_v29 = vrot.slane %v3504_v50, 5  ;;  %v3146_v50 = vld [vmem:[%s3867_s4 + $0x180] sm:$0xff]   ;;  %v3152_v40 = vld [vmem:[%s3867_s4 + $0x98] sm:$0xff]  }
 0x130   : > { %2849 = vmatprep.mubr.bf16.mxu0 %v2444_v38  ;;  %2839 = vmatprep.subr.bf16.mxu0 %v3133_v37  ;;  %v2539_v51 = vcombine.low %v868_v25, %v3570_v48  ;;  %v2459_v9 = vrot.slane %v3425_v59, 9  ;;  %v1177_v15 = vrot.slane %v3455_v57, 5  ;;  %v2461_v32 = vrot.slane %v3473_v12, 9  ;;  %v3147_v57 = vld [vmem:[%s3867_s4 + $0x88] sm:$0xff]  }
 0x131   : > { %2934 = vmatpush3.bf16.msra.mxu1 %v3131_v23  ;;  %v1185_v13 = vrot.slane %v3486_v28, 5  ;;  %v3621_v19 = vsel %vm3553_vm11, %v2460_v58, %v1181_v47  ;;  %v2445_v21 = vcombine.low %v3444_v27, %v3425_v59  ;;  %v3633_v22 = vcombine.low %v3457_v60, %v3473_v12  ;;  %v3163_v58 = vld [vmem:[%s3867_s4 + $0x1c0] sm:$0xff]   ;;  %v3174_v27 = vld [vmem:[%s3867_s4 + $0xe8] sm:$0xff]   ;;  %v3185_v59 = vld [vmem:[%s3867_s4 + $0x210] sm:$0xff]  }
 0x132   : > { %2840 = vmatpush3.bf16.msra.mxu0 %v3133_v37  ;;  %2935 = vmatprep.subr.bf16.mxu1 %v3134_v43  ;;  %v3637_v28 = vsel %vm3553_vm11, %v2462_v11, %v1189_v29  ;;  %v3641_v23 = vsel %vm3553_vm11, %v2459_v9, %v1177_v15  ;;  %v2456_v24 = vrot.slane %v3343_v31, 9  ;;  %v1165_v25 = vrot.slane %v3369_v54, 5  ;;  %v3150_v54 = vld [vmem:[%s3867_s4 + $0x90] sm:$0xff]  }
 0x133   : > { %2926 = vmatmul.mubr.bf16.gmra.mrb[4].mxu1 %v2539_v51  ;;  %2841 = vmatprep.subr.bf16.mxu0 %v3135_v45  ;;  %v2566_v30 = vcombine.low %v3641_v23, %v3621_v19  ;;  %v3650_v26 = vsel %vm3553_vm11, %v2461_v32, %v1185_v13  ;;  %v2463_v35 = vrot.slane %v3477_v20, 9  ;;  %v1193_v36 = vrot.slane %v3497_v42, 5  ;;  %v3153_v51 = vld [vmem:[%s3867_s4 + $0x198] sm:$0xff]   ;;  %v3166_v29 = vld [vmem:[%s3867_s4 + $0xd0] sm:$0xff]   ;;  %v3745_v13 = vld [vmem:[#allocation2 + $0x48] sm:$0xf] }
 0x134   : > { %2945 = vmatprep.mubr.bf16.mxu1 %v2565_v53  ;;  %v2567_v31 = vcombine.low %v3650_v26, %v3637_v28  ;;  %v2548_v37 = vrot.slane %v3509_v56, 9  ;;  %v1661_v1 = vrot.slane %v3515_v3, 5  ;;  %v1166_v2 = vsel %vm3553_vm11, %v2456_v24, %v1165_v25  ;;  %v3151_v3 = vld [vmem:[%s3867_s4 + $0x190] sm:$0xff]   ;;  %v3154_v53 = vld [vmem:[%s3867_s4 + $0xa0] sm:$0xff]   ;;  %v3170_v32 = vld [vmem:[%s3867_s4 + $0xd8] sm:$0xff]  }
 0x135   : > { %2936 = vmatpush3.bf16.msra.mxu1 %v3134_v43  ;;  %v2447_v17 = vcombine.low %v3502_v49, %v3477_v20  ;;  %v1194_v38 = vsel %vm3553_vm11, %v2463_v35, %v1193_v36  ;;  %v2480_v43 = vcombine.low %v1166_v2, %v3575_v52  ;;  %v3155_v52 = vld [vmem:[%s3867_s4 + $0x1a0] sm:$0xff]   ;;  %v3714_v47 = vcombine.low %v3563_v16, %v3641_v23  ;;  %v3165_v16 = vld [vmem:[%s3867_s4 + $0x1c8] sm:$0xff]   ;;  %v3169_v15 = vld [vmem:[%s3867_s4 + $0x1d0] sm:$0xff]  }
 0x136   : > { %2842 = vmatpush3.bf16.msra.mxu0 %v3135_v45  ;;  %2937 = vmatprep.subr.bf16.mxu1 %v3136_v55  ;;  %v3672_v42 = vsel %vm3553_vm11, %v2548_v37, %v1661_v1  ;;  %v3724_v11 = vcombine.low %v3621_v19, %v3650_v26  ;;  %v3736_v9 = vcombine.low %v3637_v28, %v1194_v38  ;;  %v1956_v28 = vshll.u32 %v3745_v13, 16  ;;  %v3178_v23 = vld [vmem:[%s3867_s4 + $0xf8] sm:$0xff]   ;;  %v3182_v26 = vld [vmem:[%s3867_s4 + $0x200] sm:$0xff]   ;;  %v3188_v20 = vld [vmem:[%s3867_s4 + $0x228] sm:$0xff]  }
 0x137   : > { %2843 = vmatprep.subr.bf16.mxu0 %v3137_v61  ;;  %v2568_v45 = vcombine.low %v1194_v38, %v3672_v42  ;;  %v2593_v19 = vcombine.low %v3509_v56, %v3745_v13  ;;  %v3179_v24 = vld [vmem:[%s3867_s4 + $0x1f8] sm:$0xff]   ;;  %v3189_v56 = vld [vmem:[%s3867_s4 + $0x230] sm:$0xff]  }
 0x138   : > { %v3186_v49 = vld [vmem:[%s3867_s4 + $0x218] sm:$0xff]  }
 0x139   : > { %2938 = vmatpush3.bf16.msra.mxu1 %v3136_v55  ;;  %v3156_v55 = vld [vmem:[%s3867_s4 + $0xa8] sm:$0xff]  }
 0x13a   : > { %2844 = vmatpush3.bf16.msra.mxu0 %v3137_v61  ;;  %2939 = vmatprep.subr.bf16.mxu1 %v3138_v5  ;;  %v3157_v61 = vld [vmem:[%s3867_s4 + $0x1a8] sm:$0xff]  }
 0x13b   : > { %2845 = vmatprep.subr.bf16.mxu0 %v3139_v34 }
 0x13d   : > { %2940 = vmatpush3.bf16.msra.mxu1 %v3138_v5  ;;  %v3158_v5 = vld [vmem:[%s3867_s4 + $0xb0] sm:$0xff]  }
 0x13e   : > { %2846 = vmatpush3.bf16.msra.mxu0 %v3139_v34  ;;  %2941 = vmatprep.subr.bf16.mxu1 %v3140_v7  ;;  %v3159_v34 = vld [vmem:[%s3867_s4 + $0x1b0] sm:$0xff]  }
 0x13f   : > { %2847 = vmatprep.subr.bf16.mxu0 %v3141_v8 }
 0x141   : > { %2942 = vmatpush3.bf16.msra.mxu1 %v3140_v7  ;;  %v3160_v7 = vld [vmem:[%s3867_s4 + $0xb8] sm:$0xff]  }
 0x142   : > { %2848 = vmatpush3.bf16.msra.mxu0 %v3141_v8  ;;  %2943 = vmatprep.subr.bf16.mxu1 %v3142_v46  ;;  %v3161_v8 = vld [vmem:[%s3867_s4 + $0x1b8] sm:$0xff]  }
 0x143   : > { %2857 = vmatprep.subr.bf16.mxu0 %v3144_v10 }
 0x145   : > { %2944 = vmatpush3.bf16.msra.mxu1 %v3142_v46  ;;  %2850 = vmatmul.mubr.bf16.vlgmr.msra.gmra.mrb[8].mxu0 %v2445_v21  ;;  %v3162_v46 = vld [vmem:[%s3867_s4 + $0xc0] sm:$0xff]  }
 0x146   : > { %2853 = vmatprep.mubr.bf16.mxu0 %v3633_v22  ;;  %2858 = vmatpush3.bf16.msra.mxu0 %v3144_v10  ;;  %v3164_v10 = vld [vmem:[%s3867_s4 + $0xc8] sm:$0xff]  }
 0x147   : > { %2953 = vmatprep.subr.bf16.mxu1 %v3146_v50  ;;  %2859 = vmatprep.subr.bf16.mxu0 %v3147_v57 }
 0x148   : > { %2946 = vmatmul.mubr.bf16.vlgmr.msra.gmra.mrb[0].mxu1 %v2566_v30  ;;  %v1958_v30 = vrot.slane %v1956_v28, 5 }
 0x149   : > { %2949 = vmatprep.mubr.bf16.mxu1 %v2567_v31  ;;  %2954 = vmatpush3.bf16.msra.mxu1 %v3146_v50  ;;  %v3172_v50 = vld [vmem:[%s3867_s4 + $0xe0] sm:$0xff]  }
 0x14a   : > { %2860 = vmatpush3.bf16.msra.mxu0 %v3147_v57  ;;  %2955 = vmatprep.subr.bf16.mxu1 %v3148_v33  ;;  %v3177_v57 = vld [vmem:[%s3867_s4 + $0x1f0] sm:$0xff]  }
 0x14b   : > { %2861 = vmatprep.subr.bf16.mxu0 %v3150_v54 }
 0x14d   : > { %2956 = vmatpush3.bf16.msra.mxu1 %v3148_v33  ;;  %2854 = vmatmul.mubr.bf16.gmra.mrb[12].mxu0 %v2447_v17  ;;  %v737_v33 = vld [vmem:[#allocation2 + $0x4c] sm:$0x1] }
 0x14e   : > { %2862 = vmatpush3.bf16.msra.mxu0 %v3150_v54  ;;  %2873 = vmatprep.mubr.bf16.mxu0 %v2480_v43  ;;  %v1962_v31 = vshll.u32 %v737_v33, 16  ;;  %v3183_v54 = vld [vmem:[%s3867_s4 + $0x208] sm:$0xff]  }
 0x14f   : > { %2957 = vmatprep.subr.bf16.mxu1 %v3151_v3  ;;  %2863 = vmatprep.subr.bf16.mxu0 %v3152_v40 }
 0x150   : > { %2950 = vmatmul.mubr.bf16.gmra.mrb[4].mxu1 %v2568_v45  ;;  %v1964_v37 = vrot.slane %v1962_v31, 5 }
 0x151   : > { %2958 = vmatpush3.bf16.msra.mxu1 %v3151_v3  ;;  %2969 = vmatprep.mubr.bf16.mxu1 %v2445_v21  ;;  %v3171_v21 = vld [vmem:[%s3867_s4 + $0x1d8] sm:$0xff]  }
 0x152   : > { %2864 = vmatpush3.bf16.msra.mxu0 %v3152_v40  ;;  %2959 = vmatprep.subr.bf16.mxu1 %v3153_v51 }
 0x153   : > { %2865 = vmatprep.subr.bf16.mxu0 %v3154_v53 }
 0x155   : > { %2960 = vmatpush3.bf16.msra.mxu1 %v3153_v51  ;;  %v2653_v51 = vld [vmem:[%s3868_s5] ss:$0 sm:$0xff] }
 0x156   : > { %2866 = vmatpush3.bf16.msra.mxu0 %v3154_v53  ;;  %2961 = vmatprep.subr.bf16.mxu1 %v3155_v52  ;;  %v2654_v53 = vld [vmem:[%s3869_s6] ss:$0 sm:$0xff] }
 0x157   : > { %2867 = vmatprep.subr.bf16.mxu0 %v3156_v55 }
 0x159   : > { %2962 = vmatpush3.bf16.msra.mxu1 %v3155_v52 }
 0x15a   : > { %2868 = vmatpush3.bf16.msra.mxu0 %v3156_v55  ;;  %2963 = vmatprep.subr.bf16.mxu1 %v3157_v61 }
 0x15b   : > { %2869 = vmatprep.subr.bf16.mxu0 %v3158_v5 }
 0x15d   : > { %2964 = vmatpush3.bf16.msra.mxu1 %v3157_v61 }
 0x15e   : > { %2870 = vmatpush3.bf16.msra.mxu0 %v3158_v5  ;;  %2965 = vmatprep.subr.bf16.mxu1 %v3159_v34 }
 0x15f   : > { %2871 = vmatprep.subr.bf16.mxu0 %v3160_v7 }
 0x161   : > { %2966 = vmatpush3.bf16.msra.mxu1 %v3159_v34 }
 0x162   : > { %2872 = vmatpush3.bf16.msra.mxu0 %v3160_v7  ;;  %2967 = vmatprep.subr.bf16.mxu1 %v3161_v8  ;;  %v2285_v7 = vld [vmem:[%s3834_s21 + $0x10] sm:$0xff] }
 0x163   : > { %2881 = vmatprep.subr.bf16.mxu0 %v3162_v46 }
 0x165   : > { %2968 = vmatpush3.bf16.msra.mxu1 %v3161_v8  ;;  %2874 = vmatmul.mubr.bf16.vlgmr.msra.gmra.mrb[8].mxu0 %v3714_v47 }
 0x166   : > { %2877 = vmatprep.mubr.bf16.mxu0 %v3724_v11  ;;  %2882 = vmatpush3.bf16.msra.mxu0 %v3162_v46 }
 0x167   : > { %2977 = vmatprep.subr.bf16.mxu1 %v3163_v58  ;;  %2883 = vmatprep.subr.bf16.mxu0 %v3164_v10 }
 0x168   : > { %2970 = vmatmul.mubr.bf16.vlgmr.msra.gmra.mrb[0].mxu1 %v3633_v22  ;;  %v1953_v22 = vshrl.u32 %v3745_v13, 16 }
 0x169   : > { %2973 = vmatprep.mubr.bf16.mxu1 %v2447_v17  ;;  %2978 = vmatpush3.bf16.msra.mxu1 %v3163_v58  ;;  %v2283_v58 = vld [vmem:[%s3834_s21] sm:$0xff] }
 0x16a   : > { %2884 = vmatpush3.bf16.msra.mxu0 %v3164_v10  ;;  %2979 = vmatprep.subr.bf16.mxu1 %v3165_v16  ;;  %v1955_v25 = vrot.slane %v1953_v22, 4 }
 0x16b   : > { %2885 = vmatprep.subr.bf16.mxu0 %v3166_v29 }
 0x16c   : > { %v1959_v35 = vor.u32 %v1958_v30, %v1955_v25 }
 0x16d   : > { %2980 = vmatpush3.bf16.msra.mxu1 %v3165_v16  ;;  %2878 = vmatmul.mubr.bf16.gmra.mrb[12].mxu0 %v3736_v9  ;;  %v2286_v16 = vld [vmem:[%s3834_s21 + $0x18] sm:$0xff] }
 0x16e   : > { %2886 = vmatpush3.bf16.msra.mxu0 %v3166_v29  ;;  %2897 = vmatprep.mubr.bf16.mxu0 %v2508_v62  ;;  %v3175_v62 = vld [vmem:[%s3867_s4 + $0x1e8] sm:$0xff]   ;;  %v1960_v36 = vrot.slane %v1959_v35, 4 }
 0x16f   : > { %2981 = vmatprep.subr.bf16.mxu1 %v3169_v15  ;;  %2887 = vmatprep.subr.bf16.mxu0 %v3170_v32 }
 0x170   : > { %2974 = vmatmul.mubr.bf16.gmra.mrb[4].mxu1 %v2593_v19  ;;  %v1965_v60 = vsel %vm3421_vm8, %v1960_v36, %v1964_v37  ;;  %v2287_v36 = vld [vmem:[%s3834_s21 + $0x20] sm:$0xff] }
 0x171   : > { %2982 = vmatpush3.bf16.msra.mxu1 %v3169_v15  ;;  %2993 = vmatprep.mubr.bf16.mxu1 %v3500_v44  ;;  %v3176_v44 = vld [vmem:[%s3867_s4 + $0xf0] sm:$0xff]   ;;  %v2618_v12 = vcombine.low %v3570_v48, %v1965_v60  ;;  %v2110_v48 = vrot.slane %v737_v33, 5  ;;  %v2290_v60 = vld [vmem:[%s3834_s21 + $0x38] sm:$0xff] }
 0x172   : > { %2888 = vmatpush3.bf16.msra.mxu0 %v3170_v32  ;;  %2983 = vmatprep.subr.bf16.mxu1 %v3171_v21  ;;  %v2284_v32 = vld [vmem:[%s3834_s21 + $0x8] sm:$0xff]  ;;  %v2289_v33 = vld [vmem:[%s3834_s21 + $0x30] sm:$0xff] }
 0x173   : > { %2889 = vmatprep.subr.bf16.mxu0 %v3172_v50 }
 0x175   : > { %2984 = vmatpush3.bf16.msra.mxu1 %v3171_v21 }
 0x176   : > { %2890 = vmatpush3.bf16.msra.mxu0 %v3172_v50  ;;  %2985 = vmatprep.subr.bf16.mxu1 %v3173_v14 }
 0x177   : > { %2891 = vmatprep.subr.bf16.mxu0 %v3174_v27 }
 0x179   : > { %2986 = vmatpush3.bf16.msra.mxu1 %v3173_v14 }
 0x17a   : > { %2892 = vmatpush3.bf16.msra.mxu0 %v3174_v27  ;;  %2987 = vmatprep.subr.bf16.mxu1 %v3175_v62 }
 0x17b   : > { %2893 = vmatprep.subr.bf16.mxu0 %v3176_v44 }
 0x17d   : > { %2988 = vmatpush3.bf16.msra.mxu1 %v3175_v62 }
 0x17e   : > { %2894 = vmatpush3.bf16.msra.mxu0 %v3176_v44  ;;  %2989 = vmatprep.subr.bf16.mxu1 %v3177_v57 }
 0x17f   : > { %2895 = vmatprep.subr.bf16.mxu0 %v3178_v23 }
 0x181   : > { %2990 = vmatpush3.bf16.msra.mxu1 %v3177_v57 }
 0x182   : > { %2896 = vmatpush3.bf16.msra.mxu0 %v3178_v23  ;;  %2991 = vmatprep.subr.bf16.mxu1 %v3179_v24 }
 0x185   : > { %2992 = vmatpush3.bf16.msra.mxu1 %v3179_v24  ;;  %2898 = vmatmul.mubr.bf16.vlgmr.msra.gmra.mrb[8].mxu0 %v2509_v63 }
 0x186   : > { %2901 = vmatprep.mubr.bf16.mxu0 %v2510_v0  ;;  %3001 = vmatprep.subr.bf16.mxu1 %v3182_v26 }
 0x188   : > { %2994 = vmatmul.mubr.bf16.vlgmr.msra.gmra.mrb[0].mxu1 %v3530_v18  ;;  %v3190_v18 = vld [vmem:[%s3867_s4 + $0x238] sm:$0xff]  }
 0x189   : > { %2997 = vmatprep.mubr.bf16.mxu1 %v3545_v39  ;;  %3002 = vmatpush3.bf16.msra.mxu1 %v3182_v26  ;;  %v2627_v39 = vrot.slane %v3745_v13, 9 }
 0x18a   : > { %3003 = vmatprep.subr.bf16.mxu1 %v3183_v54 }
 0x18b   : > { %v2111_v63 = vsel %vm3553_vm11, %v2627_v39, %v2110_v48 }
 0x18c   : > { %v2644_v0 = vcombine.low %v3672_v42, %v2111_v63 }
 0x18d   : > { %3004 = vmatpush3.bf16.msra.mxu1 %v3183_v54  ;;  %2902 = vmatmul.mubr.bf16.gmra.mrb[12].mxu0 %v2511_v4 }
 0x18e   : > { %3005 = vmatprep.subr.bf16.mxu1 %v3185_v59 }
 0x190   : > { %2998 = vmatmul.mubr.bf16.gmra.mrb[4].mxu1 %v2618_v12 }
 0x191   : > { %3006 = vmatpush3.bf16.msra.mxu1 %v3185_v59  ;;  %3017 = vmatprep.mubr.bf16.mxu1 %v3714_v47 }
 0x192   : > { %3007 = vmatprep.subr.bf16.mxu1 %v3186_v49 }
 0x195   : > { %3008 = vmatpush3.bf16.msra.mxu1 %v3186_v49 }
 0x196   : > { %3009 = vmatprep.subr.bf16.mxu1 %v3187_v6 }
 0x199   : > { %3010 = vmatpush3.bf16.msra.mxu1 %v3187_v6 }
 0x19a   : > { %3011 = vmatprep.subr.bf16.mxu1 %v3188_v20 }
 0x19d   : > { %3012 = vmatpush3.bf16.msra.mxu1 %v3188_v20  ;;  %v2288_v20 = vld [vmem:[%s3834_s21 + $0x28] sm:$0xff] }
 0x19e   : > { %3013 = vmatprep.subr.bf16.mxu1 %v3189_v56 }
 0x1a1   : > { %3014 = vmatpush3.bf16.msra.mxu1 %v3189_v56 }
 0x1a2   : > { %3015 = vmatprep.subr.bf16.mxu1 %v3190_v18 }
 0x1a5   : > { %3016 = vmatpush3.bf16.msra.mxu1 %v3190_v18 }
 0x1a8   : > { %3018 = vmatmul.mubr.bf16.vlgmr.msra.gmra.mrb[0].mxu1 %v3724_v11 }
 0x1a9   : > { %3021 = vmatprep.mubr.bf16.mxu1 %v3736_v9 }
 0x1b0   : > { %3022 = vmatmul.mubr.bf16.gmra.mrb[4].mxu1 %v2644_v0 }
 0x258   : > { %v2899_v4 = vpop.f32.mrb[8].mxu0 }
 0x259   : > { %v1458_v1 = vpop.f32.mrb[9].mxu0 }
 0x25a   : > { %v2900_v2 = vpop.f32.mrb[10].mxu0 }
 0x25b   : > { %v1461_v17 = vpop.f32.mrb[11].mxu0 }
 0x260   : > { %v2903_v38 = vpop.f32.mrb[12].mxu0 }
 0x261   : > { %v1474_v3 = vpop.f32.mrb[13].mxu0 }
 0x262   : > { %v2904_v40 = vpop.f32.mrb[14].mxu0 }
 0x263   : > { %v1477_v43 = vpop.f32.mrb[15].mxu0 }
 0x27b   : > { %v3019_v45 = vpop.f32.mrb[0].mxu1 }
 0x27c   : > { %v3025_v41 = vadd.f32 %v3019_v45, %v2899_v4  ;;  %v2214_v42 = vpop.f32.mrb[1].mxu1 }
 0x27d   : > { %v3026_v52 = vadd.f32 %v2214_v42, %v1458_v1  ;;  %v3020_v55 = vpop.f32.mrb[2].mxu1 }
 0x27e   : > { %v2262_v61 = vmul.f32 %v3025_v41, %v2653_v51  ;;  %v3027_v5 = vadd.f32 %v3020_v55, %v2900_v2  ;;  %v2217_v34 = vpop.f32.mrb[3].mxu1 }
 0x27f   : > { %v2260_v8 = vmul.f32 %v3026_v52, %v2653_v51  ;;  %v3028_v46 = vadd.f32 %v2217_v34, %v1461_v17 }
 0x280   : > { %v2277_v47 = vadd.f32 %v2654_v53, %v2262_v61  ;;  %v2263_v10 = vmul.f32 %v3027_v5, %v2653_v51 }
 0x281   : > { %v2275_v11 = vadd.f32 %v2654_v53, %v2260_v8  ;;  %v2261_v29 = vmul.f32 %v3028_v46, %v2653_v51 }
 0x282   : > { %v2293_v9 = vadd.f32 %v2285_v7, %v2277_v47  ;;  %v2278_v15 = vadd.f32 %v2654_v53, %v2263_v10 }
 0x283   : > { %v2291_v13 = vadd.f32 %v2283_v58, %v2275_v11  ;;  %v2276_v19 = vadd.f32 %v2654_v53, %v2261_v29  ;;  %v3023_v21 = vpop.f32.mrb[4].mxu1 }
 0x284   : > { %v2301_v50 = vmax.f32 %v2293_v9, 0.0  ;;  %v2294_v14 = vadd.f32 %v2286_v16, %v2278_v15  ;;  %v3029_v27 = vadd.f32 %v3023_v21, %v2903_v38  ;;  %v2230_v62 = vpop.f32.mrb[5].mxu1 }
 0x285   : > { %v2299_v44 = vmax.f32 %v2291_v13, 0.0  ;;  %v2292_v57 = vadd.f32 %v2284_v32, %v2276_v19  ;;  %v3030_v22 = vadd.f32 %v2230_v62, %v1474_v3  ;;  %v3024_v28 = vpop.f32.mrb[6].mxu1 }
 0x286   : > { %2309 = vst [vmem:[%s3846_s25 + $0x10] sm:$0xff] %v2301_v50  ;;  %v2302_v23 = vmax.f32 %v2294_v14, 0.0  ;;  %v2266_v24 = vmul.f32 %v3029_v27, %v2653_v51  ;;  %v3031_v25 = vadd.f32 %v3024_v28, %v2904_v40  ;;  %v2233_v30 = vpop.f32.mrb[7].mxu1 }
 0x287   : > { %2307 = vst [vmem:[%s3846_s25] sm:$0xff] %v2299_v44  ;;  %v2300_v26 = vmax.f32 %v2292_v57, 0.0  ;;  %v2264_v35 = vmul.f32 %v3030_v22, %v2653_v51  ;;  %v3032_v31 = vadd.f32 %v2233_v30, %v1477_v43 }
 0x288   : > { %2310 = vst [vmem:[%s3846_s25 + $0x18] sm:$0xff] %v2302_v23  ;;  %v2281_v54 = vadd.f32 %v2654_v53, %v2266_v24  ;;  %v2267_v37 = vmul.f32 %v3031_v25, %v2653_v51 }
 0x289   : > { %2308 = vst [vmem:[%s3846_s25 + $0x8] sm:$0xff] %v2300_v26  ;;  %v2279_v59 = vadd.f32 %v2654_v53, %v2264_v35  ;;  %v2265_v12 = vmul.f32 %v3032_v31, %v2653_v51 }
 0x28a   : > { %v2297_v49 = vadd.f32 %v2289_v33, %v2281_v54  ;;  %v2282_v6 = vadd.f32 %v2654_v53, %v2267_v37 }
 0x28b   : > { %v2295_v56 = vadd.f32 %v2287_v36, %v2279_v59  ;;  %v2280_v18 = vadd.f32 %v2654_v53, %v2265_v12 }
 0x28c   : > { %v2305_v39 = vmax.f32 %v2297_v49, 0.0  ;;  %v2298_v48 = vadd.f32 %v2290_v60, %v2282_v6 }
 0x28d   : > { %v2303_v63 = vmax.f32 %v2295_v56, 0.0  ;;  %v2296_v0 = vadd.f32 %v2288_v20, %v2280_v18 }
 0x28e   : > { %2313 = vst [vmem:[%s3846_s25 + $0x30] sm:$0xff] %v2305_v39  ;;  %v2306_v4 = vmax.f32 %v2298_v48, 0.0 }
 0x28f   : > { %2311 = vst [vmem:[%s3846_s25 + $0x20] sm:$0xff] %v2303_v63  ;;  %v2304_v1 = vmax.f32 %v2296_v0, 0.0 }
 0x290   : > { %2314 = vst [vmem:[%s3846_s25 + $0x38] sm:$0xff] %v2306_v4 }
 0x291   : > { %2312 = vst [vmem:[%s3846_s25 + $0x28] sm:$0xff] %v2304_v1 }
 0x292 PF: > { %s18_s27 = sadd.s32 1, %s3197_s27  }
 0x293   : > { %p15_p4 = scmp.ge.s32.totalorder %s18_s27, 4  }
 0x295   :  { %17 = sbr.rel (!%p15_p4) target bundleno = 1 (0x1), region = 94 }

</bundles_post_ra>
